<compile_context>
chip_gen: v6e
topology: v6e:2x2x1
jax: 0.10.0
libtpu: 0.0.40
codegen_flags: <defaults>
</compile_context>

<pallas_src>
import functools

import jax
import jax.numpy as jnp
from jax import lax
from jax.experimental import pallas as pl
from jax.experimental.pallas import tpu as pltpu


def _patch_gather_kernel(T, precision, idx_ref, x_ref, o_ref, onehot_ref):
    """Gather kept tokens for one (batch-block, D-tile) grid cell.

    idx_ref    : VMEM int32 [bb, out_tokens, 1] — source-row index per output row
    x_ref      : VMEM       [bb, T, d_tile]     — batch block of the input
    o_ref      : VMEM       [bb, out_tokens, d_tile]
    onehot_ref : VMEM scratch [bb, out_tokens, T] — selection matrix; persists
                 across the innermost ("arbitrary") D axis of the grid.
    """
    bb, out_t, _ = idx_ref.shape

    # Build the 0/1 selection matrix once per batch block (at D tile 0) and
    # reuse it for every subsequent D tile — VPU work hoisted out of the D loop.
    @pl.when(pl.program_id(1) == 0)
    def _():
        idx = idx_ref[...]                                          # (bb, out_t, 1)
        cols = lax.broadcasted_iota(jnp.int32, (bb, out_t, T), 2)   # (bb, out_t, T)
        onehot_ref[...] = jnp.where(idx == cols, 1.0, 0.0).astype(onehot_ref.dtype)

    # One-hot selection on the MXU (free slack in this memory-bound kernel).
    gathered = jnp.einsum(
        "bot,btd->bod", onehot_ref[...], x_ref[...],
        preferred_element_type=jnp.float32, precision=precision)
    o_ref[...] = gathered.astype(o_ref.dtype)


def _vmem_budgets():
    """Generation-aware (per-step block budget, scoped vmem_limit_bytes)."""
    cap = 128 << 20
    try:
        cap = int(pltpu.get_tpu_info().vmem_capacity_bytes)
    except Exception:
        pass
    if cap <= (64 << 20):                 # v7x: 64 MiB per TensorCore
        return 20 << 20, 32 << 20
    return 32 << 20, 48 << 20             # v5e / v6e: 128 MiB physical


def _pick_tiles(B, T, out_tokens, D, itemsize, budget_bytes):
    """Pick (bb, d_tile): batch rows per grid step and lane tile of D."""

    def fits(bb, dt):
        work = (2 * bb * T * dt                 # x block (double-buffered)
                + 2 * bb * out_tokens * dt      # out block (double-buffered)
                + bb * out_tokens * T           # one-hot VMEM scratch
                ) * itemsize + 2 * bb * out_tokens * 4   # idx block (int32)
        return work <= budget_bytes

    # Divisors of B up to 8; prefer keeping >= 2 batch blocks so the "parallel"
    # batch axis can still split across v7x's two TensorCores.
    divs = [d for d in range(min(8, B), 0, -1) if B % d == 0]
    pref = [d for d in divs if B // d >= 2] or divs

    if D % 128 == 0:
        d_tiles = [t for t in range(D, 0, -128) if D % t == 0]
    else:
        d_tiles = [D]   # last dim must equal the full array dim if not /128

    for bb in pref:
        for dt in d_tiles:
            if fits(bb, dt):
                return bb, dt
    return 1, d_tiles[-1]


def patch_dropout(x, prob, key, *, training=True, exclude_first_token=True,
                  return_indices=False):
    """JAX/Pallas equivalent of PatchDropout.forward.

    `return_indices` mirrors the `os.getenv('RoPE') == '1'` branch of the
    original module (returns (x, patch_indices_keep) when training).  Like the
    original, the eval / prob==0 path returns bare x.
    """
    assert 0 <= prob < 1.0
    if not training or prob == 0.0:
        return x

    B, T, D = x.shape
    num_tokens = T - 1 if exclude_first_token else T
    keep_prob = 1.0 - prob
    num_keep = max(1, int(num_tokens * keep_prob))

    # rand ~ N(0,1), top-k indices in descending-value order (torch.topk order).
    rand = jax.random.normal(key, (B, num_tokens), dtype=jnp.float32)
    _, patch_indices_keep = lax.top_k(rand, num_keep)
    patch_indices_keep = patch_indices_keep.astype(jnp.int32)

    # Fold the cls token + the (+1) offset into a single gather-index table so
    # the kernel does one dense selection / one store per block.
    if exclude_first_token:
        gather_idx = jnp.concatenate(
            [jnp.zeros((B, 1), jnp.int32), patch_indices_keep + 1], axis=1)
    else:
        gather_idx = patch_indices_keep
    out_tokens = gather_idx.shape[1]

    if not jnp.issubdtype(x.dtype, jnp.floating):
        # TODO(synk): integer/quantized activations need a copy-based gather
        # kernel (the v7x MXU has no int datapath); use a plain XLA gather.
        out = x[jnp.arange(B)[:, None], gather_idx]
        return (out, patch_indices_keep) if return_indices else out

    # (B, out_tokens, 1): column layout so indices land along sublanes
    # in-kernel (no lane->sublane relayout when building the one-hot).
    gather_idx3 = gather_idx[:, :, None]

    budget, vmem_limit = _vmem_budgets()
    bb, d_tile = _pick_tiles(B, T, out_tokens, D, x.dtype.itemsize, budget)
    nb, n_d = B // bb, D // d_tile

    # precision=HIGHEST is load-bearing for f32 (default would truncate the
    # values to bf16 inside the MXU); bf16 uses the native single-pass path.
    # Note (v5e): for f32 with very long T this multi-pass matmul can approach
    # the DMA time; tiles are kept modest by the VMEM budget so it stays hidden.
    precision = lax.Precision.HIGHEST if x.dtype == jnp.float32 else None
    kernel = functools.partial(_patch_gather_kernel, T, precision)

    cost = pl.CostEstimate(
        flops=2 * B * out_tokens * T * D,
        transcendentals=0,
        bytes_accessed=(B * T * D + B * out_tokens * D) * x.dtype.itemsize
                       + B * out_tokens * 4,
    )

    out = pl.pallas_call(
        kernel,
        out_shape=jax.ShapeDtypeStruct((B, out_tokens, D), x.dtype),
        grid=(nb, n_d),
        in_specs=[
            pl.BlockSpec((bb, out_tokens, 1), lambda b, d: (b, 0, 0)),
            pl.BlockSpec((bb, T, d_tile), lambda b, d: (b, 0, d)),
        ],
        out_specs=pl.BlockSpec((bb, out_tokens, d_tile), lambda b, d: (b, 0, d)),
        scratch_shapes=[pltpu.VMEM((bb, out_tokens, T), x.dtype)],
        compiler_params=pltpu.CompilerParams(
            dimension_semantics=("parallel", "arbitrary"),
            vmem_limit_bytes=vmem_limit),
        cost_estimate=cost,
    )(gather_idx3, x)

    if return_indices:
        return out, patch_indices_keep
    return out


if __name__ == "__main__":
    # Small deterministic example: batch=2, 1 cls token + 8 patches, hidden=128.
    B, N_PATCH, D = 2, 8, 128
    T = N_PATCH + 1
    prob = 0.5

    key = jax.random.PRNGKey(0)
    kx, kdrop = jax.random.split(key)
    x = jax.random.normal(kx, (B, T, D), dtype=jnp.float32)

    out, idx = patch_dropout(x, prob, kdrop, training=True,
                             exclude_first_token=True, return_indices=True)
    out = jax.block_until_ready(out)

    # Pure-JAX reference of the gather semantics (cls token kept + gathered body).
    batch_indices = jnp.arange(B)[:, None]
    ref_body = x[:, 1:][batch_indices, idx]
    ref = jnp.concatenate([x[:, :1], ref_body], axis=1)

    num_keep = max(1, int(N_PATCH * (1.0 - prob)))
    assert out.shape == (B, 1 + num_keep, D), out.shape
    assert out.dtype == x.dtype
    assert jnp.allclose(out, ref, rtol=1e-5, atol=1e-5), "mismatch vs reference gather"

    # bf16 path exercises the default-precision MXU branch (gather stays exact).
    x_bf = x.astype(jnp.bfloat16)
    out_bf, idx_bf = patch_dropout(x_bf, prob, kdrop, training=True,
                                   exclude_first_token=True, return_indices=True)
    out_bf = jax.block_until_ready(out_bf)
    ref_bf = jnp.concatenate([x_bf[:, :1], x_bf[:, 1:][batch_indices, idx_bf]], axis=1)
    assert out_bf.dtype == jnp.bfloat16
    assert jnp.array_equal(out_bf, ref_bf), "mismatch (bf16 path)"

    # exclude_first_token=False path.
    out2 = jax.block_until_ready(
        patch_dropout(x, prob, kdrop, training=True, exclude_first_token=False))
    nk2 = max(1, int(T * (1.0 - prob)))
    rand2 = jax.random.normal(kdrop, (B, T), dtype=jnp.float32)
    _, idx2 = lax.top_k(rand2, nk2)
    ref2 = x[batch_indices, idx2]
    assert out2.shape == (B, nk2, D)
    assert jnp.allclose(out2, ref2, rtol=1e-5, atol=1e-5), "mismatch (no-cls path)"

    # eval / prob==0 path is identity.
    assert jnp.allclose(patch_dropout(x, prob, kdrop, training=False), x)

    print("KERNEL_OK")
</pallas_src>

<mosaic_0001>
module attributes {stable_mosaic.version = 11 : i64} {
  func.func @_patch_gather_kernel(%arg0: i32, %arg1: i32, %arg2: memref<1x5x1xi32, #tpu.memory_space<vmem>>, %arg3: memref<1x9x128xf32, #tpu.memory_space<vmem>>, %arg4: memref<1x5x128xf32, #tpu.memory_space<vmem>>, %arg5: memref<1x5x9xf32, #tpu.memory_space<vmem>>) attributes {dimension_semantics = [#tpu.dimension_semantics<parallel>, #tpu.dimension_semantics<arbitrary>], iteration_bounds = array<i64: 2, 1>, scalar_prefetch = 0 : i64, scratch_operands = 1 : i64, tpu.core_type = #tpu.core_type<tc>, window_params = [{transform_indices = @transform_0, window_bounds = array<i64: 1, 5, 1>}, {transform_indices = @transform_1, window_bounds = array<i64: 1, 9, 128>}, {transform_indices = @transform_2, window_bounds = array<i64: 1, 5, 128>}]} {
    %c0_i32 = arith.constant 0 : i32
    %0 = arith.cmpi eq, %arg1, %c0_i32 : i32
    %1 = arith.extui %0 : i1 to i32
    %c0_i32_0 = arith.constant 0 : i32
    %2 = arith.cmpi ne, %1, %c0_i32_0 : i32
    scf.if %2 {
      %c0_9 = arith.constant 0 : index
      %c0_10 = arith.constant 0 : index
      %c0_11 = arith.constant 0 : index
      %7 = vector.load %arg2[%c0_9, %c0_10, %c0_11] : memref<1x5x1xi32, #tpu.memory_space<vmem>>, vector<1x5x1xi32>
      %8 = tpu.iota {dimensions = array<i32: 2>} : vector<1x5x9xi32>
      %9 = vector.broadcast %7 : vector<1x5x1xi32> to vector<1x5x9xi32>
      %10 = arith.cmpi eq, %9, %8 : vector<1x5x9xi32>
      %cst_12 = arith.constant 1.000000e+00 : f32
      %cst_13 = arith.constant 0.000000e+00 : f32
      %11 = vector.broadcast %cst_12 : f32 to vector<1x5x9xf32>
      %12 = vector.broadcast %cst_13 : f32 to vector<1x5x9xf32>
      %13 = arith.select %10, %11, %12 : vector<1x5x9xi1>, vector<1x5x9xf32>
      %c0_14 = arith.constant 0 : index
      %c0_15 = arith.constant 0 : index
      %c0_16 = arith.constant 0 : index
      %14 = vector.load %arg5[%c0_14, %c0_15, %c0_16] : memref<1x5x9xf32, #tpu.memory_space<vmem>>, vector<1x5x9xf32>
      tpu.vector_store %arg5[%c0_14, %c0_15, %c0_16], %13 {strides = array<i32>} : memref<1x5x9xf32, #tpu.memory_space<vmem>>, vector<1x5x9xf32>,
    } else {
    }
    %c0 = arith.constant 0 : index
    %c0_1 = arith.constant 0 : index
    %c0_2 = arith.constant 0 : index
    %3 = vector.load %arg5[%c0, %c0_1, %c0_2] : memref<1x5x9xf32, #tpu.memory_space<vmem>>, vector<1x5x9xf32>
    %c0_3 = arith.constant 0 : index
    %c0_4 = arith.constant 0 : index
    %c0_5 = arith.constant 0 : index
    %4 = vector.load %arg3[%c0_3, %c0_4, %c0_5] : memref<1x9x128xf32, #tpu.memory_space<vmem>>, vector<1x9x128xf32>
    "tpu.trace_start"() <{level = 10 : i32, message = "bot,btd->bod"}> : () -> ()
    %cst = arith.constant dense<0.000000e+00> : vector<1x5x128xf32>
    %5 = tpu.matmul %3, %4, %cst {dimension_numbers = #tpu.dot_dimension_numbers<[2], [1], [1], [2], [0, 0, 0, 1, 1, 2], [0], [0]>, precision = #tpu.contract_precision<fp32>} : vector<1x5x9xf32>, vector<1x9x128xf32>, vector<1x5x128xf32> -> vector<1x5x128xf32>
    "tpu.trace_stop"() : () -> ()
    %c0_6 = arith.constant 0 : index
    %c0_7 = arith.constant 0 : index
    %c0_8 = arith.constant 0 : index
    %6 = vector.load %arg4[%c0_6, %c0_7, %c0_8] : memref<1x5x128xf32, #tpu.memory_space<vmem>>, vector<1x5x128xf32>
    tpu.vector_store %arg4[%c0_6, %c0_7, %c0_8], %5 {strides = array<i32>} : memref<1x5x128xf32, #tpu.memory_space<vmem>>, vector<1x5x128xf32>,
    return
  }
  func.func @transform_0(%arg0: i32, %arg1: i32) -> (i32, i32, i32) {
    %c0_i32 = arith.constant 0 : i32
    %c0_i32_0 = arith.constant 0 : i32
    %c0_i32_1 = arith.constant 0 : i32
    return %arg0, %c0_i32, %c0_i32_0 : i32, i32, i32
  }
  func.func @transform_1(%arg0: i32, %arg1: i32) -> (i32, i32, i32) {
    %c0_i32 = arith.constant 0 : i32
    %c0_i32_0 = arith.constant 0 : i32
    return %arg0, %c0_i32, %arg1 : i32, i32, i32
  }
  func.func @transform_2(%arg0: i32, %arg1: i32) -> (i32, i32, i32) {
    %c0_i32 = arith.constant 0 : i32
    %c0_i32_0 = arith.constant 0 : i32
    return %arg0, %c0_i32, %arg1 : i32, i32, i32
  }
}

</mosaic_0001>

<bundles_post_ra>
// kernel: tpu_custom_call.1
= control target key start
LH: loop header
LB: loop body
LE: loop exit
PB: predicated region body
PF: predicated region fallthrough
CT: control target
= control target key end

     0   :  { %s906_s9 = smov 0   ;;  %s908_s10 = smov 0   ;;  %s975_s0 = inlined_call_operand.vmem [shape: s32[2,5,1], index: 0, kind: input, shape index: {}]   ;;  %s976_s1 = inlined_call_operand.vmem [shape: f32[2,9,128], index: 1, kind: input, shape index: {}]   ;;  %s977_s2 = inlined_call_operand.vmem [shape: f32[2,5,128], index: 2, kind: output, shape index: {}]  }
   0x1   :  { %s910_s11 = smov 0  }
   0x2 LB: > { %s24_s12 = sadd.s32 1, %s882_s10  ;;  %p768_p0 = scmp.ge.s32.totalorder %s886_s11, 1  ;;  %s886_s11 = sphi %s910_s11, %s12_s11   ;;  %s882_s10 = sphi %s908_s10, %s979_s10   ;;  %s878_s9 = sphi %s906_s9, %s978_s9  }
   0x3   : > { %p26_p1 = scmp.ge.s32.totalorder %s24_s12, 2  ;;  %p140_p2 = scmp.lt.s32.totalorder %s886_s11, 3 }
   0x5   : > { %s981_s12 = smov (%p26_p1, %s24_s12), 0  ;;  %p141_p3 = pnand %p768_p0, %p140_p2 }
   0x6   : > { %p171_p4 = scmp.lt.s32.totalorder (!%p141_p3), %s878_s9, 1 }
   0x7   : > { %144 = sbr.rel (%p141_p3) target bundleno = 367 (0x16f), region = 28 }
   0xc   : > { %v888_v0 = vmov 0   ;;  %v889_v1 = vmov 0.0   ;;  %s983_s9 = smov (!%p171_p4, %s878_s9), 1  ;;  %vm211_vm0 = vcmask 1040384   ;;  %vm890_vm1 = vmmov 0  }
   0xd   : > { %863 = vset.pattern.permute.xlu0 %v888_v0  ;;  %801 = vmatprep.subr.mxu1 %v889_v1  ;;  %s769_s13 = sshll.u32 %s983_s9, 3  ;;  %s775_s14 = sshll.u32 %s983_s9, 4  ;;  %v195_v16 = vlaneseq  ;;  %vm202_vm2 = vcmask 69632   ;;  %vm207_vm4 = vcmask 72704  }
   0xe   : > { %794 = vmatprep.subr.mxu0 %v889_v1  ;;  %s174_s17 = scalar_lea.vmem %s975_s0, %s769_s13  ;;  %s182_s20 = scalar_lea.vmem %s976_s1, %s775_s14  ;;  %805 = vmatprep.mubr.msk.f32.mxu1 %vm890_vm1, %v889_v1 }
   0xf   : > { %v194_v2 = vld [vmem:[%s174_s17] sm:$0x1f]  ;;  %v206_v4 = vld [vmem:[%s182_s20 + $0x8] sm:$0x1]  ;;  %798 = vmatprep.mubr.msk.f32.mxu0 %vm890_vm1, %v889_v1  ;;  %v196_v17 = vand.u32 127, %v195_v16  ;;  %s189_s23 = scalar_lea.vmem %s977_s2, %s769_s13 }
  0x10   : > { %v205_v3 = vld [vmem:[%s182_s20] sm:$0xff]  ;;  %198 = vperm.xlu0 %863, %v194_v2   ;;  %v213_v6 = vsel %vm211_vm0, %v206_v4, 0 }
  0x11   : > { %v247_v5 = vand.u32 4294901760, %v205_v3  ;;  %v244_v7 = vand.u32 4294901760, %v213_v6 }
  0x13   : > { %v329_v8 = vsub.f32 %v205_v3, %v247_v5  ;;  %v322_v9 = vsub.f32 %v213_v6, %v244_v7  ;;  %795 = vmatpush3.msra.mxu0 %v244_v7 }
  0x14   : > { %796 = vmatprep.subr.mxu0 %v889_v1 }
  0x15   : > { %v330_v10 = vand.u32 4294901760, %v329_v8  ;;  %v323_v11 = vand.u32 4294901760, %v322_v9  ;;  %797 = vmatpush3.msra.mxu0 %v247_v5 }
  0x16   : > { %808 = vmatprep.subr.mxu0 %v889_v1 }
  0x17   : > { %v331_v12 = vsub.f32 %v329_v8, %v330_v10  ;;  %v324_v13 = vsub.f32 %v322_v9, %v323_v11 }
  0x19   : > { %v325_v14 = vand.u32 4294901760, %v324_v13  ;;  %v332_v15 = vand.u32 4294901760, %v331_v12 }
  0x1b   : > { %802 = vmatpush3.msra.mxu1 %v325_v14 }
  0x1c   : > { %803 = vmatprep.subr.mxu1 %v889_v1 }
  0x1d   : > { %804 = vmatpush3.msra.mxu1 %v332_v15 }
  0x1e   : > { %815 = vmatprep.subr.mxu1 %v889_v1 }
  0x8b   : > { %v199_v18 = vpop.permute.xlu0 %198 }
  0x8c   : > { %vm200_vm3 = vcmp.eq.s32.totalorder %v199_v18, %v196_v17 }
  0x8d   : > { %v201_v19 = vsel %vm200_vm3, 1.0, %v889_v1 }
  0x8e   : > { %203 = vst.msk [vmem:[#allocation2] sm:$0x1f] %vm202_vm2, %v201_v19 }
  0x95   : > { %v204_v20 = vld [vmem:[#allocation2] sm:$0x1f] }
  0x96   : > { %v209_v21 = vsel %vm207_vm4, %v204_v20, 0 }
  0x97   : > { %v282_v22 = vand.u32 4294901760, %v209_v21 }
  0x99   : > { %v283_v23 = vsub.f32 %v209_v21, %v282_v22  ;;  %806 = vmatmul.mubr.f32.vlgmr.msra.gmra.mxu1 %v282_v22 }
  0x9a   : > { %816 = vmatpush3.msra.mxu1 %v244_v7  ;;  %819 = vmatprep.mubr.msk.f32.mxu1 %vm890_vm1, %v889_v1 }
  0x9b   : > { %817 = vmatprep.subr.mxu1 %v889_v1  ;;  %v284_v24 = vand.u32 4294901760, %v283_v23 }
  0x9c   : > { %818 = vmatpush3.msra.mxu1 %v247_v5 }
  0x9d   : > { %820 = vmatmul.mubr.f32.vlgmr.msra.gmra.mxu1 %v284_v24  ;;  %829 = vmatprep.subr.mxu1 %v889_v1  ;;  %v285_v25 = vsub.f32 %v283_v23, %v284_v24 }
  0x9e   : > { %830 = vmatpush3.msra.mxu1 %v244_v7  ;;  %833 = vmatprep.mubr.msk.f32.mxu1 %vm890_vm1, %v889_v1 }
  0x9f   : > { %831 = vmatprep.subr.mxu1 %v889_v1  ;;  %v286_v26 = vand.u32 4294901760, %v285_v25 }
  0xa0   : > { %832 = vmatpush3.msra.mxu1 %v247_v5 }
  0xa1   : > { %799 = vmatmul.mubr.f32.vlgmr.msra.gmra.mxu0 %v286_v26  ;;  %834 = vmatmul.mubr.f32.vlgmr.msra.gmra.mxu1 %v282_v22 }
  0xa2   : > { %809 = vmatpush3.msra.mxu0 %v322_v9  ;;  %812 = vmatprep.mubr.msk.f32.mxu0 %vm890_vm1, %v889_v1 }
  0xa3   : > { %810 = vmatprep.subr.mxu0 %v889_v1 }
  0xa4   : > { %811 = vmatpush3.msra.mxu0 %v329_v8 }
  0xa5   : > { %822 = vmatprep.subr.mxu0 %v889_v1  ;;  %813 = vmatmul.mubr.f32.vlgmr.msra.gmra.mxu0 %v283_v23 }
  0xa6   : > { %823 = vmatpush3.msra.mxu0 %v323_v11  ;;  %826 = vmatprep.mubr.msk.f32.mxu0 %vm890_vm1, %v889_v1 }
  0xa7   : > { %824 = vmatprep.subr.mxu0 %v889_v1 }
  0xa8   : > { %825 = vmatpush3.msra.mxu0 %v330_v10 }
  0xa9   : > { %827 = vmatmul.mubr.f32.vlgmr.msra.gmra.mxu0 %v282_v22 }
 0x159   : > { %v369_v27 = vpop.f32.mrf.mxu1 }
 0x15b   : > { %v807_v28 = vpop.f32.mrf.mxu1 }
 0x15d   : > { %v520_v29 = vpop.f32.mrf.mxu1 }
 0x15f   : > { %v821_v30 = vpop.f32.mrf.mxu1 }
 0x161   : > { %v288_v31 = vpop.f32.mrf.mxu0  ;;  %v670_v32 = vpop.f32.mrf.mxu1 }
 0x162   : > { %v370_v35 = vadd.f32 %v369_v27, %v288_v31 }
 0x163   : > { %v800_v33 = vpop.f32.mrf.mxu0  ;;  %v835_v34 = vpop.f32.mrf.mxu1 }
 0x165   : > { %v445_v36 = vpop.f32.mrf.mxu0 }
 0x166   : > { %v446_v37 = vadd.f32 %v445_v36, %v370_v35 }
 0x167   : > { %v814_v38 = vpop.f32.mrf.mxu0 }
 0x168   : > { %v521_v39 = vadd.f32 %v520_v29, %v446_v37 }
 0x169   : > { %v597_v40 = vpop.f32.mrf.mxu0 }
 0x16a   : > { %v598_v41 = vadd.f32 %v597_v40, %v521_v39 }
 0x16b   : > { %v828_v42 = vpop.f32.mrf.mxu0 }
 0x16c   : > { %v671_v43 = vadd.f32 %v670_v32, %v598_v41 }
 0x16e   : > { %674 = vst [vmem:[%s189_s23] sm:$0x1f] %v671_v43 }
 0x16f PF: > { %s12_s11 = sadd.s32 1, %s886_s11   ;;  %s978_s9 = smov %s882_s10 }
 0x170   : > { %p9_p5 = scmp.ge.s32.totalorder %s12_s11, 4   ;;  %s979_s10 = smov %s981_s12 }
 0x172   :  { %11 = sbr.rel (!%p9_p5) target bundleno = 2 (0x2), region = 65 }

</bundles_post_ra>
